<compile_context>
chip_gen: v7x
topology: tpu7x:2x2x1
jax: 0.10.0
libtpu: 0.0.40
codegen_flags: <defaults>
</compile_context>

<pallas_src>
import functools

import jax
import jax.numpy as jnp
from jax.experimental import pallas as pl
from jax.experimental.pallas import tpu as pltpu


def _round_up(v, m):
    return (v + m - 1) // m * m


def _attentive_agg_kernel(x_ref, w_ref, b_ref, cw_ref, cb_ref,
                          agg_ref, attn_ref, *, n_views):
    """Fused AttentiveAggregator forward for one batch tile.

    x_ref : (N, TB, Dmax_pad)   padded, stacked inputs
    w_ref : (N, Dmax_pad, D_pad) padded, stacked projection weights (pre-transposed)
    b_ref : (N, 1, D_pad)        padded projection biases
    cw_ref: (1, D_pad)           1x1 Conv1d weight over the channel dim
    cb_ref: (1, 1) SMEM          Conv1d bias (scalar)
    agg_ref : (TB, D_pad)        attention-weighted sum
    attn_ref: (TB, N_pad)        attention values (lane-dense, zero padded)
    """
    cw = cw_ref[...]                       # (1, D_pad)
    cb = cb_ref[0, 0]                      # scalar

    projs = []
    logits = []
    for n in range(n_views):               # static, small N -> unrolled
        x = x_ref[n]                       # (TB, Dmax_pad)
        p = jnp.dot(x, w_ref[n], preferred_element_type=jnp.float32) + b_ref[n]
        projs.append(p)                    # (TB, D_pad)
        # kernel-size-1 Conv1d over channels == dot with a (D,) weight + bias
        logits.append(jnp.sum(p * cw, axis=-1, keepdims=True) + cb)   # (TB, 1)

    # Softmax over the view axis, done column-wise (all shapes (TB, 1)).
    m = logits[0]
    for n in range(1, n_views):
        m = jnp.maximum(m, logits[n])
    exps = [jnp.exp(l - m) for l in logits]
    denom = exps[0]
    for n in range(1, n_views):
        denom = denom + exps[n]
    inv = 1.0 / denom
    attns = [e * inv for e in exps]        # each (TB, 1)

    # Attention-weighted sum of the projections.
    agg = projs[0] * attns[0]
    for n in range(1, n_views):
        agg = agg + projs[n] * attns[n]
    agg_ref[...] = agg.astype(agg_ref.dtype)

    # Lane-dense attention output: concat the N columns + zero tail to N_pad.
    tb = attns[0].shape[0]
    tail = attn_ref.shape[-1] - n_views
    pieces = attns + ([jnp.zeros((tb, tail), jnp.float32)] if tail else [])
    attn_ref[...] = jnp.concatenate(pieces, axis=-1).astype(attn_ref.dtype)


def init_attentive_aggregator_params(key, input_dim_list, output_dim=None):
    """Build padded/stacked parameters matching torch's AttentiveAggregator."""
    if output_dim is None:
        output_dim = min(input_dim_list)
    n_views = len(input_dim_list)
    dmax_pad = _round_up(max(input_dim_list), 128)
    d_pad = _round_up(output_dim, 128)

    keys = jax.random.split(key, n_views + 1)
    w_stk = jnp.zeros((n_views, dmax_pad, d_pad), jnp.float32)
    b_stk = jnp.zeros((n_views, 1, d_pad), jnp.float32)
    for n, din in enumerate(input_dim_list):
        kw, kb = jax.random.split(keys[n])
        lim = 1.0 / float(jnp.sqrt(jnp.float32(din)))
        # torch stores Linear weight as (Dout, Din); we keep the transpose.
        w = jax.random.uniform(kw, (din, output_dim), jnp.float32, -lim, lim)
        b = jax.random.uniform(kb, (output_dim,), jnp.float32, -lim, lim)
        w_stk = w_stk.at[n, :din, :output_dim].set(w)
        b_stk = b_stk.at[n, 0, :output_dim].set(b)

    kcw, kcb = jax.random.split(keys[-1])
    lim = 1.0 / float(jnp.sqrt(jnp.float32(output_dim)))
    conv_w = jnp.zeros((1, d_pad), jnp.float32).at[0, :output_dim].set(
        jax.random.uniform(kcw, (output_dim,), jnp.float32, -lim, lim))
    conv_b = jax.random.uniform(kcb, (1, 1), jnp.float32, -lim, lim)
    return {"w": w_stk, "b": b_stk, "conv_w": conv_w, "conv_b": conv_b,
            "output_dim": int(output_dim)}


def attentive_aggregator(x_list, params, *, batch_tile=128):
    """x_list: list of (B, Din_i) arrays.  Returns ((B, Dout), (B, N))."""
    w_stk, b_stk = params["w"], params["b"]
    conv_w, conv_b = params["conv_w"], params["conv_b"]
    out_dim = params["output_dim"]
    n_views, dmax_pad, d_pad = w_stk.shape
    B = x_list[0].shape[0]

    tb = min(batch_tile, _round_up(B, 8))          # batch tile, multiple of 8
    b_pad = _round_up(B, tb)
    n_pad = _round_up(n_views, 128)                # lane-dense attn output

    # Pad + stack inputs: (N, B_pad, Dmax_pad).  Zero padding is exact because
    # the corresponding weight rows are zero.
    x_stk = jnp.stack([
        jnp.pad(x.astype(jnp.float32),
                ((0, b_pad - B), (0, dmax_pad - x.shape[1])))
        for x in x_list])

    kernel = functools.partial(_attentive_agg_kernel, n_views=n_views)
    agg, attn = pl.pallas_call(
        kernel,
        out_shape=(jax.ShapeDtypeStruct((b_pad, d_pad), jnp.float32),
                   jax.ShapeDtypeStruct((b_pad, n_pad), jnp.float32)),
        grid=(b_pad // tb,),
        in_specs=[
            pl.BlockSpec((n_views, tb, dmax_pad), lambda i: (0, i, 0)),
            pl.BlockSpec((n_views, dmax_pad, d_pad), lambda i: (0, 0, 0)),
            pl.BlockSpec((n_views, 1, d_pad), lambda i: (0, 0, 0)),
            pl.BlockSpec((1, d_pad), lambda i: (0, 0)),
            pl.BlockSpec(memory_space=pltpu.MemorySpace.SMEM),
        ],
        out_specs=(
            pl.BlockSpec((tb, d_pad), lambda i: (i, 0)),
            pl.BlockSpec((tb, n_pad), lambda i: (i, 0)),
        ),
        compiler_params=pltpu.CompilerParams(
            dimension_semantics=("parallel",)),
    )(x_stk, w_stk, b_stk, conv_w, conv_b)

    return agg[:B, :out_dim], attn[:B, :n_views]


def attentive_aggregator_ref(x_list, params):
    """Pure-JAX reference (mirrors the PyTorch forward)."""
    out_dim = params["output_dim"]
    projs = []
    for n, x in enumerate(x_list):
        din = x.shape[1]
        w = params["w"][n, :din, :out_dim]
        b = params["b"][n, 0, :out_dim]
        projs.append(x @ w + b)
    x_proj = jnp.stack(projs, -1)                           # (B, D, N)
    cw = params["conv_w"][0, :out_dim]                      # (D,)
    logits = jnp.einsum("bdn,d->bn", x_proj, cw) + params["conv_b"][0, 0]
    attn = jax.nn.softmax(logits, axis=-1)                  # (B, N)
    agg = jnp.einsum("bdn,bn->bd", x_proj, attn)            # (B, D)
    return agg, attn


if __name__ == "__main__":
    input_dim_list = [48, 96, 64]
    output_dim = min(input_dim_list)        # torch default: min(input_dim_list)
    batch = 16

    key = jax.random.PRNGKey(0)
    keys = jax.random.split(key, 1 + len(input_dim_list))
    params = init_attentive_aggregator_params(keys[0], input_dim_list, output_dim)
    x_list = [jax.random.normal(k, (batch, din), jnp.float32)
              for k, din in zip(keys[1:], input_dim_list)]

    agg, attn = attentive_aggregator(x_list, params)
    agg, attn = jax.block_until_ready((agg, attn))

    assert agg.shape == (batch, output_dim), agg.shape
    assert attn.shape == (batch, len(input_dim_list)), attn.shape
    assert jnp.all(jnp.isfinite(agg)) and jnp.all(jnp.isfinite(attn))
    # Softmax rows must sum to 1.
    assert jnp.allclose(jnp.sum(attn, axis=-1), 1.0, atol=1e-3)

    agg_ref, attn_ref = attentive_aggregator_ref(x_list, params)
    assert jnp.allclose(agg, agg_ref, rtol=2e-2, atol=2e-2)
    assert jnp.allclose(attn, attn_ref, rtol=2e-2, atol=2e-2)
    print("KERNEL_OK")
</pallas_src>

<mosaic_0001>
module attributes {stable_mosaic.version = 11 : i64} {
  func.func @_attentive_agg_kernel(%arg0: i32, %arg1: memref<3x16x128xf32, #tpu.memory_space<vmem>>, %arg2: memref<3x128x128xf32, #tpu.memory_space<vmem>>, %arg3: memref<3x1x128xf32, #tpu.memory_space<vmem>>, %arg4: memref<1x128xf32, #tpu.memory_space<vmem>>, %arg5: memref<1x1xf32, #tpu.memory_space<smem>>, %arg6: memref<16x128xf32, #tpu.memory_space<vmem>>, %arg7: memref<16x128xf32, #tpu.memory_space<vmem>>) attributes {dimension_semantics = [#tpu.dimension_semantics<parallel>], iteration_bounds = array<i64: 1>, scalar_prefetch = 0 : i64, scratch_operands = 0 : i64, tpu.core_type = #tpu.core_type<tc>, window_params = [{transform_indices = @transform_0, window_bounds = array<i64: 3, 16, 128>}, {pipeline_mode = #tpu.pipeline_mode<synchronous>, transform_indices = @transform_1, window_bounds = array<i64: 3, 128, 128>}, {pipeline_mode = #tpu.pipeline_mode<synchronous>, transform_indices = @transform_2, window_bounds = array<i64: 3, 1, 128>}, {pipeline_mode = #tpu.pipeline_mode<synchronous>, transform_indices = @transform_3, window_bounds = array<i64: 1, 128>}, {transform_indices = @transform_4, window_bounds = array<i64: 1, 1>}, {transform_indices = @transform_5, window_bounds = array<i64: 16, 128>}, {transform_indices = @transform_6, window_bounds = array<i64: 16, 128>}]} {
    %c0 = arith.constant 0 : index
    %c0_0 = arith.constant 0 : index
    %0 = vector.load %arg4[%c0, %c0_0] : memref<1x128xf32, #tpu.memory_space<vmem>>, vector<1x128xf32>
    %c0_1 = arith.constant 0 : index
    %c0_2 = arith.constant 0 : index
    %1 = memref.load %arg5[%c0_1, %c0_2] : memref<1x1xf32, #tpu.memory_space<smem>>
    %c0_3 = arith.constant 0 : index
    %c0_4 = arith.constant 0 : index
    %c0_5 = arith.constant 0 : index
    %2 = vector.load %arg1[%c0_3, %c0_4, %c0_5] : memref<3x16x128xf32, #tpu.memory_space<vmem>>, vector<1x16x128xf32>
    %3 = vector.shape_cast %2 : vector<1x16x128xf32> to vector<16x128xf32>
    %c0_6 = arith.constant 0 : index
    %c0_7 = arith.constant 0 : index
    %c0_8 = arith.constant 0 : index
    %4 = vector.load %arg2[%c0_6, %c0_7, %c0_8] : memref<3x128x128xf32, #tpu.memory_space<vmem>>, vector<1x128x128xf32>
    %5 = vector.shape_cast %4 : vector<1x128x128xf32> to vector<128x128xf32>
    %cst = arith.constant dense<0.000000e+00> : vector<16x128xf32>
    %6 = tpu.matmul %3, %5, %cst {dimension_numbers = #tpu.dot_dimension_numbers<[1], [0], [0], [1], [0, 0, 1, 1], [], []>} : vector<16x128xf32>, vector<128x128xf32>, vector<16x128xf32> -> vector<16x128xf32>
    %c0_9 = arith.constant 0 : index
    %c0_10 = arith.constant 0 : index
    %c0_11 = arith.constant 0 : index
    %7 = vector.load %arg3[%c0_9, %c0_10, %c0_11] : memref<3x1x128xf32, #tpu.memory_space<vmem>>, vector<1x1x128xf32>
    %8 = vector.shape_cast %7 : vector<1x1x128xf32> to vector<1x128xf32>
    %9 = vector.broadcast %8 : vector<1x128xf32> to vector<16x128xf32>
    %10 = arith.addf %6, %9 : vector<16x128xf32>
    %11 = vector.broadcast %0 : vector<1x128xf32> to vector<16x128xf32>
    %12 = arith.mulf %10, %11 : vector<16x128xf32>
    %cst_12 = arith.constant dense<0.000000e+00> : vector<16xf32>
    %13 = vector.multi_reduction <add>, %12, %cst_12 [1] : vector<16x128xf32> to vector<16xf32>
    %14 = vector.shape_cast %13 : vector<16xf32> to vector<16x1xf32>
    %15 = vector.broadcast %1 : f32 to vector<16x1xf32>
    %16 = arith.addf %14, %15 : vector<16x1xf32>
    %c1 = arith.constant 1 : index
    %c0_13 = arith.constant 0 : index
    %c0_14 = arith.constant 0 : index
    %17 = vector.load %arg1[%c1, %c0_13, %c0_14] : memref<3x16x128xf32, #tpu.memory_space<vmem>>, vector<1x16x128xf32>
    %18 = vector.shape_cast %17 : vector<1x16x128xf32> to vector<16x128xf32>
    %c1_15 = arith.constant 1 : index
    %c0_16 = arith.constant 0 : index
    %c0_17 = arith.constant 0 : index
    %19 = vector.load %arg2[%c1_15, %c0_16, %c0_17] : memref<3x128x128xf32, #tpu.memory_space<vmem>>, vector<1x128x128xf32>
    %20 = vector.shape_cast %19 : vector<1x128x128xf32> to vector<128x128xf32>
    %cst_18 = arith.constant dense<0.000000e+00> : vector<16x128xf32>
    %21 = tpu.matmul %18, %20, %cst_18 {dimension_numbers = #tpu.dot_dimension_numbers<[1], [0], [0], [1], [0, 0, 1, 1], [], []>} : vector<16x128xf32>, vector<128x128xf32>, vector<16x128xf32> -> vector<16x128xf32>
    %c1_19 = arith.constant 1 : index
    %c0_20 = arith.constant 0 : index
    %c0_21 = arith.constant 0 : index
    %22 = vector.load %arg3[%c1_19, %c0_20, %c0_21] : memref<3x1x128xf32, #tpu.memory_space<vmem>>, vector<1x1x128xf32>
    %23 = vector.shape_cast %22 : vector<1x1x128xf32> to vector<1x128xf32>
    %24 = vector.broadcast %23 : vector<1x128xf32> to vector<16x128xf32>
    %25 = arith.addf %21, %24 : vector<16x128xf32>
    %26 = vector.broadcast %0 : vector<1x128xf32> to vector<16x128xf32>
    %27 = arith.mulf %25, %26 : vector<16x128xf32>
    %cst_22 = arith.constant dense<0.000000e+00> : vector<16xf32>
    %28 = vector.multi_reduction <add>, %27, %cst_22 [1] : vector<16x128xf32> to vector<16xf32>
    %29 = vector.shape_cast %28 : vector<16xf32> to vector<16x1xf32>
    %30 = vector.broadcast %1 : f32 to vector<16x1xf32>
    %31 = arith.addf %29, %30 : vector<16x1xf32>
    %c2 = arith.constant 2 : index
    %c0_23 = arith.constant 0 : index
    %c0_24 = arith.constant 0 : index
    %32 = vector.load %arg1[%c2, %c0_23, %c0_24] : memref<3x16x128xf32, #tpu.memory_space<vmem>>, vector<1x16x128xf32>
    %33 = vector.shape_cast %32 : vector<1x16x128xf32> to vector<16x128xf32>
    %c2_25 = arith.constant 2 : index
    %c0_26 = arith.constant 0 : index
    %c0_27 = arith.constant 0 : index
    %34 = vector.load %arg2[%c2_25, %c0_26, %c0_27] : memref<3x128x128xf32, #tpu.memory_space<vmem>>, vector<1x128x128xf32>
    %35 = vector.shape_cast %34 : vector<1x128x128xf32> to vector<128x128xf32>
    %cst_28 = arith.constant dense<0.000000e+00> : vector<16x128xf32>
    %36 = tpu.matmul %33, %35, %cst_28 {dimension_numbers = #tpu.dot_dimension_numbers<[1], [0], [0], [1], [0, 0, 1, 1], [], []>} : vector<16x128xf32>, vector<128x128xf32>, vector<16x128xf32> -> vector<16x128xf32>
    %c2_29 = arith.constant 2 : index
    %c0_30 = arith.constant 0 : index
    %c0_31 = arith.constant 0 : index
    %37 = vector.load %arg3[%c2_29, %c0_30, %c0_31] : memref<3x1x128xf32, #tpu.memory_space<vmem>>, vector<1x1x128xf32>
    %38 = vector.shape_cast %37 : vector<1x1x128xf32> to vector<1x128xf32>
    %39 = vector.broadcast %38 : vector<1x128xf32> to vector<16x128xf32>
    %40 = arith.addf %36, %39 : vector<16x128xf32>
    %41 = vector.broadcast %0 : vector<1x128xf32> to vector<16x128xf32>
    %42 = arith.mulf %40, %41 : vector<16x128xf32>
    %cst_32 = arith.constant dense<0.000000e+00> : vector<16xf32>
    %43 = vector.multi_reduction <add>, %42, %cst_32 [1] : vector<16x128xf32> to vector<16xf32>
    %44 = vector.shape_cast %43 : vector<16xf32> to vector<16x1xf32>
    %45 = vector.broadcast %1 : f32 to vector<16x1xf32>
    %46 = arith.addf %44, %45 : vector<16x1xf32>
    %47 = arith.maximumf %16, %31 : vector<16x1xf32>
    %48 = arith.maximumf %47, %46 : vector<16x1xf32>
    %49 = arith.subf %16, %48 : vector<16x1xf32>
    %50 = math.exp %49 : vector<16x1xf32>
    %51 = arith.subf %31, %48 : vector<16x1xf32>
    %52 = math.exp %51 : vector<16x1xf32>
    %53 = arith.subf %46, %48 : vector<16x1xf32>
    %54 = math.exp %53 : vector<16x1xf32>
    %55 = arith.addf %50, %52 : vector<16x1xf32>
    %56 = arith.addf %55, %54 : vector<16x1xf32>
    %cst_33 = arith.constant 1.000000e+00 : f32
    %57 = vector.broadcast %cst_33 : f32 to vector<16x1xf32>
    %58 = arith.divf %57, %56 : vector<16x1xf32>
    %59 = arith.mulf %50, %58 : vector<16x1xf32>
    %60 = arith.mulf %52, %58 : vector<16x1xf32>
    %61 = arith.mulf %54, %58 : vector<16x1xf32>
    %62 = vector.broadcast %59 : vector<16x1xf32> to vector<16x128xf32>
    %63 = arith.mulf %10, %62 : vector<16x128xf32>
    %64 = vector.broadcast %60 : vector<16x1xf32> to vector<16x128xf32>
    %65 = arith.mulf %25, %64 : vector<16x128xf32>
    %66 = arith.addf %63, %65 : vector<16x128xf32>
    %67 = vector.broadcast %61 : vector<16x1xf32> to vector<16x128xf32>
    %68 = arith.mulf %40, %67 : vector<16x128xf32>
    %69 = arith.addf %66, %68 : vector<16x128xf32>
    %c0_34 = arith.constant 0 : index
    %c0_35 = arith.constant 0 : index
    %70 = vector.load %arg6[%c0_34, %c0_35] : memref<16x128xf32, #tpu.memory_space<vmem>>, vector<16x128xf32>
    tpu.vector_store %arg6[%c0_34, %c0_35], %69 {strides = array<i32>} : memref<16x128xf32, #tpu.memory_space<vmem>>, vector<16x128xf32>,
    %cst_36 = arith.constant 0.000000e+00 : f32
    %71 = vector.broadcast %cst_36 : f32 to vector<16x125xf32>
    %72 = tpu.concatenate %59, %60, %61, %71 in 1 : vector<16x1xf32>, vector<16x1xf32>, vector<16x1xf32>, vector<16x125xf32> -> vector<16x128xf32>
    %c0_37 = arith.constant 0 : index
    %c0_38 = arith.constant 0 : index
    %73 = vector.load %arg7[%c0_37, %c0_38] : memref<16x128xf32, #tpu.memory_space<vmem>>, vector<16x128xf32>
    tpu.vector_store %arg7[%c0_37, %c0_38], %72 {strides = array<i32>} : memref<16x128xf32, #tpu.memory_space<vmem>>, vector<16x128xf32>,
    return
  }
  func.func @transform_0(%arg0: i32) -> (i32, i32, i32) {
    %c0_i32 = arith.constant 0 : i32
    %c0_i32_0 = arith.constant 0 : i32
    %c0_i32_1 = arith.constant 0 : i32
    return %c0_i32, %arg0, %c0_i32_0 : i32, i32, i32
  }
  func.func @transform_1(%arg0: i32) -> (i32, i32, i32) {
    %c0_i32 = arith.constant 0 : i32
    %c0_i32_0 = arith.constant 0 : i32
    %c0_i32_1 = arith.constant 0 : i32
    %c0_i32_2 = arith.constant 0 : i32
    return %c0_i32, %c0_i32_0, %c0_i32_1 : i32, i32, i32
  }
  func.func @transform_2(%arg0: i32) -> (i32, i32, i32) {
    %c0_i32 = arith.constant 0 : i32
    %c0_i32_0 = arith.constant 0 : i32
    %c0_i32_1 = arith.constant 0 : i32
    %c0_i32_2 = arith.constant 0 : i32
    return %c0_i32, %c0_i32_0, %c0_i32_1 : i32, i32, i32
  }
  func.func @transform_3(%arg0: i32) -> (i32, i32) {
    %c0_i32 = arith.constant 0 : i32
    %c0_i32_0 = arith.constant 0 : i32
    %c0_i32_1 = arith.constant 0 : i32
    return %c0_i32, %c0_i32_0 : i32, i32
  }
  func.func @transform_4(%arg0: i32) -> (i32, i32) {
    %c0_i32 = arith.constant 0 : i32
    %c0_i32_0 = arith.constant 0 : i32
    %c0_i32_1 = arith.constant 0 : i32
    return %c0_i32, %c0_i32_0 : i32, i32
  }
  func.func @transform_5(%arg0: i32) -> (i32, i32) {
    %c0_i32 = arith.constant 0 : i32
    %c0_i32_0 = arith.constant 0 : i32
    return %arg0, %c0_i32 : i32, i32
  }
  func.func @transform_6(%arg0: i32) -> (i32, i32) {
    %c0_i32 = arith.constant 0 : i32
    %c0_i32_0 = arith.constant 0 : i32
    return %arg0, %c0_i32 : i32, i32
  }
}

</mosaic_0001>

<bundles_post_ra>
// kernel: tpu_custom_call.1
= control target key start
LH: loop header
LB: loop body
LE: loop exit
PB: predicated region body
PF: predicated region fallthrough
CT: control target
= control target key end

     0   :  { %13 = vsyncpa [#allocation4], 0  ;;  %s1017_s0 = inlined_call_operand.hbm [shape: f32[3,16,128], index: 0, kind: input, shape index: {}]   ;;  %s1018_s1 = inlined_call_operand.hbm [shape: f32[3,128,128], index: 1, kind: input, shape index: {}]   ;;  %s1019_s2 = inlined_call_operand.vmem [shape: f32[3,1,128], index: 2, kind: input, shape index: {}]   ;;  %s1020_s3 = inlined_call_operand.vmem [shape: f32[1,128], index: 3, kind: input, shape index: {}]   ;;  %s1021_s4 = inlined_call_operand.<no memory space> [shape: f32[1,1], index: 4, kind: input, shape index: {}]   ;;  %s1022_s5 = inlined_call_operand.hbm [shape: f32[16,128], index: 5, kind: output, shape index: {0}]   ;;  %s1023_s6 = inlined_call_operand.hbm [shape: f32[16,128], index: 6, kind: output, shape index: {1}]  }
   0x1   :  { %14 = vsyncpa [#allocation7], 0 }
   0x2   :  { %15 = vsyncpa [#allocation5], 0 }
   0x3   :  { %16 = vsyncpa [#allocation10], 0  ;;  %s864_s21 = smov [#allocation3]   ;;  %s768_s25 = scalar_lea.hbm %s1017_s0, 768 }
   0x4   :  { %s22_s22 = sshll.u32 %s864_s21, 4  ;;  %p769_p0 = scmp.ne.s32.totalorder %s1017_s0, %s768_s25  ;;  %s23_s22 = int_to_ptr.vmem [resolvable:$true] %s22_s22 }
   0x5   :  { %p772_p1 = scmp.lt.u32.totalorder %s768_s25, %s1017_s0 }
   0x7   :  { %p774_p2 = pnand %p772_p1, %p769_p0 }
   0x9   :  { %777 = shalt.err (!%p774_p2)
}
   0xa   :  { %s778_s30 = scalar_lea.vmem %s23_s22, 768  ;;  %p783_p4 = scmp.lt.s32.totalorder %s23_s22, %s23_s22 }
   0xb   :  { %p779_p3 = scmp.ne.s32.totalorder %s23_s22, %s778_s30  ;;  %p784_p5 = scmp.lt.s32.totalorder %s778_s30, %s778_s30 }
   0xd   :  { %p785_p6 = por %p784_p5, %p783_p4 }
   0xf   :  { %p786_p7 = pnand %p785_p6, %p779_p3 }
  0x11   :  { %789 = shalt.err (!%p786_p7)
}
  0x12   :  { %s865_s7 = smov 128   ;;  %s866_s8 = smov 8  }
  0x13   :  { %28 = dma.hbm_to_vmem [thread:$0]  %s1017_s0, 768, %s23_s22, [#allocation4], %s865_s7, %s865_s7, %s866_s8  }
  0x14   :  { %s867_s11 = smov [#allocation6]   ;;  %s790_s15 = scalar_lea.hbm %s1018_s1, 6144 }
  0x15   :  { %s34_s12 = sshll.u32 %s867_s11, 4  ;;  %p791_p8 = scmp.ne.s32.totalorder %s1018_s1, %s790_s15  ;;  %s35_s12 = int_to_ptr.vmem [resolvable:$true] %s34_s12 }
  0x16   :  { %p794_p9 = scmp.lt.u32.totalorder %s790_s15, %s1018_s1 }
  0x18   :  { %p796_p10 = pnand %p794_p9, %p791_p8 }
  0x1a   :  { %799 = shalt.err (!%p796_p10)
}
  0x1b   :  { %s800_s20 = scalar_lea.vmem %s35_s12, 6144  ;;  %p805_p12 = scmp.lt.s32.totalorder %s35_s12, %s35_s12 }
  0x1c   :  { %p801_p11 = scmp.ne.s32.totalorder %s35_s12, %s800_s20  ;;  %p806_p13 = scmp.lt.s32.totalorder %s800_s20, %s800_s20 }
  0x1e   :  { %p807_p0 = por %p806_p13, %p805_p12 }
  0x20   :  { %p808_p1 = pnand %p807_p0, %p801_p11 }
  0x22   :  { %811 = shalt.err (!%p808_p1)
}
  0x23   :  { %40 = dma.hbm_to_vmem [thread:$0]  %s1018_s1, 6144, %s35_s12, [#allocation7], %s865_s7, %s865_s7, %s866_s8  }
  0x24   :  { %856 = dma.done.wait [#allocation4], 768  }
  0x25   :  { %857 = vsyncadd [#allocation4], 4294966528 }
  0x26   :  { %858 = dma.done.wait [#allocation7], 6144  }
  0x27   :  { %859 = vsyncadd [#allocation7], 4294961152  ;;  %v57_v0 = vld [vmem:[#allocation6] sm:$0xff]  ;;  %v58_v1 = vld [vmem:[#allocation6 + $0x8] sm:$0xff]  ;;  %vm440_vm0 = vcmask 7168   ;;  %vm443_vm1 = vcmask 15360  }
  0x28   :  { %v174_v2 = vld [vmem:[#allocation6 + $0x80] sm:$0xff]  ;;  %v650_v3 = vpack.c.bf16 %v58_v1, %v57_v0  ;;  %v175_v4 = vld [vmem:[#allocation6 + $0x88] sm:$0xff]  ;;  %v59_v5 = vld [vmem:[#allocation6 + $0x10] sm:$0xff]  ;;  %vm446_vm2 = vcmask 23552   ;;  %s869_s30 = smov [#allocation8]  }
  0x29   :  { %v60_v6 = vld [vmem:[#allocation6 + $0x18] sm:$0xff]  ;;  %v682_v7 = vpack.c.bf16 %v175_v4, %v174_v2  ;;  %v176_v9 = vld [vmem:[#allocation6 + $0x90] sm:$0xff]  ;;  %v61_v11 = vld [vmem:[#allocation6 + $0x20] sm:$0xff]  ;;  %s456_s9 = sshll.u32 %s869_s30, 4  ;;  %s980_s9 = int_to_ptr.vmem [resolvable:$true] %s456_s9 }
  0x2a   :  { %v654_v8 = vpack.c.bf16 %v60_v6, %v59_v5  ;;  %v177_v10 = vld [vmem:[#allocation6 + $0x98] sm:$0xff]  ;;  %651 = vmatprep.subr.bf16.mxu0 %v650_v3  ;;  %v62_v13 = vld [vmem:[#allocation6 + $0x28] sm:$0xff]  ;;  %v178_v14 = vld [vmem:[#allocation6 + $0xa0] sm:$0xff] }
  0x2b   :  { %v686_v12 = vpack.c.bf16 %v177_v10, %v176_v9  ;;  %v179_v15 = vld [vmem:[#allocation6 + $0xa8] sm:$0xff]  ;;  %683 = vmatprep.subr.bf16.mxu1 %v682_v7  ;;  %653 = vmatpush3.bf16.msra.mxu0 %v650_v3  ;;  %v658_v16 = vpack.c.bf16 %v62_v13, %v61_v11  ;;  %v63_v18 = vld [vmem:[#allocation6 + $0x30] sm:$0xff]  ;;  %v64_v19 = vld [vmem:[#allocation6 + $0x38] sm:$0xff] }
  0x2c   :  { %685 = vmatpush3.bf16.msra.mxu1 %v682_v7  ;;  %655 = vmatprep.subr.bf16.mxu0 %v654_v8  ;;  %v690_v17 = vpack.c.bf16 %v179_v15, %v178_v14  ;;  %v180_v20 = vld [vmem:[#allocation6 + $0xb0] sm:$0xff]  ;;  %v181_v21 = vld [vmem:[#allocation6 + $0xb8] sm:$0xff]  ;;  %v662_v22 = vpack.c.bf16 %v64_v19, %v63_v18  ;;  %v65_v24 = vld [vmem:[#allocation6 + $0x40] sm:$0xff] }
  0x2d   :  { %687 = vmatprep.subr.bf16.mxu1 %v686_v12  ;;  %v694_v23 = vpack.c.bf16 %v181_v21, %v180_v20  ;;  %v66_v25 = vld [vmem:[#allocation6 + $0x48] sm:$0xff]  ;;  %v55_v26 = vld [vmem:[#allocation3] sm:$0xff]  ;;  %v182_v27 = vld [vmem:[#allocation6 + $0xc0] sm:$0xff] }
  0x2e   :  { %v183_v28 = vld [vmem:[#allocation6 + $0xc8] sm:$0xff]  ;;  %577 = vmatprep.mubr.f32.mxu0 %v55_v26  ;;  %v171_v29 = vld [vmem:[#allocation3 + $0x10] sm:$0xff]  ;;  %v666_v30 = vpack.c.bf16 %v66_v25, %v65_v24  ;;  %v67_v32 = vld [vmem:[#allocation6 + $0x50] sm:$0xff] }
  0x2f   :  { %657 = vmatpush3.bf16.msra.mxu0 %v654_v8  ;;  %612 = vmatprep.mubr.f32.mxu1 %v171_v29  ;;  %v698_v31 = vpack.c.bf16 %v183_v28, %v182_v27  ;;  %v68_v33 = vld [vmem:[#allocation6 + $0x58] sm:$0xff]  ;;  %v184_v34 = vld [vmem:[#allocation6 + $0xd0] sm:$0xff]  ;;  %v69_v38 = vld [vmem:[#allocation6 + $0x60] sm:$0xff] }
  0x30   :  { %689 = vmatpush3.bf16.msra.mxu1 %v686_v12  ;;  %659 = vmatprep.subr.bf16.mxu0 %v658_v16  ;;  %v185_v35 = vld [vmem:[#allocation6 + $0xd8] sm:$0xff]  ;;  %v670_v36 = vpack.c.bf16 %v68_v33, %v67_v32  ;;  %v70_v39 = vld [vmem:[#allocation6 + $0x68] sm:$0xff]  ;;  %v186_v40 = vld [vmem:[#allocation6 + $0xe0] sm:$0xff] }
  0x31   :  { %691 = vmatprep.subr.bf16.mxu1 %v690_v17  ;;  %v702_v37 = vpack.c.bf16 %v185_v35, %v184_v34  ;;  %v187_v41 = vld [vmem:[#allocation6 + $0xe8] sm:$0xff]  ;;  %v674_v42 = vpack.c.bf16 %v70_v39, %v69_v38  ;;  %v71_v44 = vld [vmem:[#allocation6 + $0x70] sm:$0xff]  ;;  %v72_v45 = vld [vmem:[#allocation6 + $0x78] sm:$0xff]  ;;  %v167_v38 = vstv %s1021_s4 }
  0x32   :  { %v706_v43 = vpack.c.bf16 %v187_v41, %v186_v40  ;;  %v188_v46 = vld [vmem:[#allocation6 + $0xf0] sm:$0xff]  ;;  %v189_v47 = vld [vmem:[#allocation6 + $0xf8] sm:$0xff]  ;;  %v678_v48 = vpack.c.bf16 %v72_v45, %v71_v44  ;;  %v285_v50 = vld [vmem:[#allocation6 + $0x100] sm:$0xff] }
  0x33   :  { %661 = vmatpush3.bf16.msra.mxu0 %v658_v16  ;;  %v710_v49 = vpack.c.bf16 %v189_v47, %v188_v46  ;;  %v286_v51 = vld [vmem:[#allocation6 + $0x108] sm:$0xff]  ;;  %v287_v53 = vld [vmem:[#allocation6 + $0x110] sm:$0xff]  ;;  %v288_v54 = vld [vmem:[#allocation6 + $0x118] sm:$0xff] }
  0x34   :  { %693 = vmatpush3.bf16.msra.mxu1 %v690_v17  ;;  %663 = vmatprep.subr.bf16.mxu0 %v662_v22  ;;  %v714_v52 = vpack.c.bf16 %v286_v51, %v285_v50  ;;  %v56_v55 = vld [vmem:[#allocation3 + $0x8] sm:$0xff]  ;;  %v172_v56 = vld [vmem:[#allocation3 + $0x18] sm:$0xff]  ;;  %v718_v57 = vpack.c.bf16 %v288_v54, %v287_v53  ;;  %v289_v58 = vld [vmem:[#allocation6 + $0x120] sm:$0xff] }
  0x35   :  { %695 = vmatprep.subr.bf16.mxu1 %v694_v23  ;;  %v290_v59 = vld [vmem:[#allocation6 + $0x128] sm:$0xff]  ;;  %v282_v60 = vld [vmem:[#allocation3 + $0x20] sm:$0xff]  ;;  %v292_v63 = vld [vmem:[#allocation6 + $0x138] sm:$0xff] }
  0x36   :  { %v722_v61 = vpack.c.bf16 %v290_v59, %v289_v58  ;;  %v291_v62 = vld [vmem:[#allocation6 + $0x130] sm:$0xff]  ;;  %v293_v1 = vld [vmem:[#allocation6 + $0x140] sm:$0xff]  ;;  %v294_v2 = vld [vmem:[#allocation6 + $0x148] sm:$0xff] }
  0x37   :  { %665 = vmatpush3.bf16.msra.mxu0 %v662_v22  ;;  %v726_v0 = vpack.c.bf16 %v292_v63, %v291_v62  ;;  %v730_v3 = vpack.c.bf16 %v294_v2, %v293_v1  ;;  %v295_v4 = vld [vmem:[#allocation6 + $0x150] sm:$0xff]  ;;  %v296_v5 = vld [vmem:[#allocation6 + $0x158] sm:$0xff]  ;;  %v297_v7 = vld [vmem:[#allocation6 + $0x160] sm:$0xff] }
  0x38   :  { %697 = vmatpush3.bf16.msra.mxu1 %v694_v23  ;;  %667 = vmatprep.subr.bf16.mxu0 %v666_v30  ;;  %v734_v6 = vpack.c.bf16 %v296_v5, %v295_v4  ;;  %v298_v8 = vld [vmem:[#allocation6 + $0x168] sm:$0xff]  ;;  %v299_v10 = vld [vmem:[#allocation6 + $0x170] sm:$0xff]  ;;  %v300_v11 = vld [vmem:[#allocation6 + $0x178] sm:$0xff] }
  0x39   :  { %699 = vmatprep.subr.bf16.mxu1 %v698_v31  ;;  %v738_v9 = vpack.c.bf16 %v298_v8, %v297_v7  ;;  %v742_v12 = vpack.c.bf16 %v300_v11, %v299_v10  ;;  %v283_v13 = vld [vmem:[#allocation3 + $0x28] sm:$0xff]  ;;  %v485_v14 = vld [vmem:[%s1019_s2] ss:$0 sm:$0xff]  ;;  %v488_v15 = vld [vmem:[%s1019_s2 + $0x1] ss:$0 sm:$0xff] }
  0x3a   :  { %v486_v17 = vld [vmem:[%s1020_s3] ss:$0 sm:$0xff]  ;;  %v490_v29 = vld [vmem:[%s1019_s2 + $0x2] ss:$0 sm:$0xff]  ;;  %s868_s2 = smov [#allocation9]  }
  0x3b   :  { %669 = vmatpush3.bf16.msra.mxu0 %v666_v30  ;;  %s468_s4 = sshll.u32 %s868_s2, 4  ;;  %s469_s4 = int_to_ptr.vmem [resolvable:$true] %s468_s4 }
  0x3c   :  { %701 = vmatpush3.bf16.msra.mxu1 %v698_v31  ;;  %671 = vmatprep.subr.bf16.mxu0 %v670_v36  ;;  %s812_s10 = scalar_lea.vmem %s469_s4, 256  ;;  %p817_p3 = scmp.lt.s32.totalorder %s469_s4, %s469_s4 }
  0x3d   :  { %703 = vmatprep.subr.bf16.mxu1 %v702_v37  ;;  %p813_p2 = scmp.ne.s32.totalorder %s469_s4, %s812_s10  ;;  %p818_p4 = scmp.lt.s32.totalorder %s812_s10, %s812_s10 }
  0x3f   :  { %673 = vmatpush3.bf16.msra.mxu0 %v670_v36  ;;  %p819_p5 = por %p818_p4, %p817_p3 }
  0x40   :  { %705 = vmatpush3.bf16.msra.mxu1 %v702_v37  ;;  %675 = vmatprep.subr.bf16.mxu0 %v674_v42 }
  0x41   :  { %707 = vmatprep.subr.bf16.mxu1 %v706_v43  ;;  %p820_p6 = pnand %p819_p5, %p813_p2 }
  0x43   :  { %677 = vmatpush3.bf16.msra.mxu0 %v674_v42 }
  0x44   :  { %709 = vmatpush3.bf16.msra.mxu1 %v706_v43  ;;  %679 = vmatprep.subr.bf16.mxu0 %v678_v48 }
  0x45   :  { %711 = vmatprep.subr.bf16.mxu1 %v710_v49 }
  0x47   :  { %681 = vmatpush3.bf16.msra.mxu0 %v678_v48 }
  0x48   :  { %713 = vmatpush3.bf16.msra.mxu1 %v710_v49  ;;  %715 = vmatprep.subr.bf16.mxu0 %v714_v52 }
  0x4a   :  { %578 = vmatmul.mubr.f32.vlgmr.msra.gmra.mrb[0].mxu0 %v56_v55 }
  0x4b   :  { %613 = vmatmul.mubr.f32.vlgmr.msra.gmra.mrb[0].mxu1 %v172_v56  ;;  %717 = vmatpush3.bf16.msra.mxu0 %v714_v52 }
  0x4c   :  { %719 = vmatprep.subr.bf16.mxu0 %v718_v57  ;;  %647 = vmatprep.mubr.f32.mxu0 %v282_v60 }
  0x4f   :  { %721 = vmatpush3.bf16.msra.mxu0 %v718_v57 }
  0x50   :  { %723 = vmatprep.subr.bf16.mxu0 %v722_v61 }
  0x53   :  { %725 = vmatpush3.bf16.msra.mxu0 %v722_v61 }
  0x54   :  { %727 = vmatprep.subr.bf16.mxu0 %v726_v0 }
  0x57   :  { %729 = vmatpush3.bf16.msra.mxu0 %v726_v0 }
  0x58   :  { %731 = vmatprep.subr.bf16.mxu0 %v730_v3 }
  0x5b   :  { %733 = vmatpush3.bf16.msra.mxu0 %v730_v3 }
  0x5c   :  { %735 = vmatprep.subr.bf16.mxu0 %v734_v6 }
  0x5f   :  { %737 = vmatpush3.bf16.msra.mxu0 %v734_v6 }
  0x60   :  { %739 = vmatprep.subr.bf16.mxu0 %v738_v9 }
  0x63   :  { %741 = vmatpush3.bf16.msra.mxu0 %v738_v9 }
  0x64   :  { %743 = vmatprep.subr.bf16.mxu0 %v742_v12 }
  0x67   :  { %745 = vmatpush3.bf16.msra.mxu0 %v742_v12 }
  0x6a   :  { %648 = vmatmul.mubr.f32.vlgmr.msra.gmra.mrb[2].mxu0 %v283_v13 }
 0x11d   :  { %v579_v16 = vpop.f32.mrb[0].mxu0 }
 0x11e   :  { %v944_v18 = vadd.f32 %v579_v16, %v485_v14  ;;  %v614_v19 = vpop.f32.mrb[0].mxu1  ;;  %v146_v20 = vpop.f32.mrb[1].mxu0 }
 0x11f   :  { %v946_v21 = vadd.f32 %v614_v19, %v488_v15  ;;  %v264_v22 = vpop.f32.mrb[1].mxu1  ;;  %v948_v23 = vadd.f32 %v485_v14, %v146_v20 }
 0x120   :  { %v950_v24 = vadd.f32 %v488_v15, %v264_v22  ;;  %v162_v25 = vmul.f32 %v486_v17, %v944_v18 }
 0x121   :  { %v274_v26 = vmul.f32 %v486_v17, %v946_v21  ;;  %v161_v28 = vmul.f32 %v486_v17, %v948_v23 }
 0x122   :  { %165 = vadd.xlane.f32.xlu0 %v162_v25  ;;  %v273_v27 = vmul.f32 %v486_v17, %v950_v24 }
 0x123   :  { %277 = vadd.xlane.f32.xlu1 %v274_v26 }
 0x126   :  { %163 = vadd.xlane.f32.xlu0 %v161_v28 }
 0x127   :  { %275 = vadd.xlane.f32.xlu1 %v273_v27 }
 0x13d   :  { %v649_v30 = vpop.f32.mrb[2].mxu0 }
 0x13e   :  { %v959_v31 = vadd.f32 %v649_v30, %v490_v29  ;;  %v375_v32 = vpop.f32.mrb[3].mxu0 }
 0x13f   :  { %v961_v33 = vadd.f32 %v490_v29, %v375_v32 }
 0x140   :  { %v385_v34 = vmul.f32 %v486_v17, %v959_v31 }
 0x141   :  { %v384_v35 = vmul.f32 %v486_v17, %v961_v33 }
 0x142   :  { %388 = vadd.xlane.f32.xlu1 %v385_v34 }
 0x143   :  { %386 = vadd.xlane.f32.xlu0 %v384_v35 }
 0x1af   :  { %v166_v37 = vpop.xlane.xlu0 %165 }
 0x1b0   :  { %v278_v36 = vpop.xlane.xlu1 %277  ;;  %v169_v42 = vadd.f32 %v167_v38, %v166_v37 }
 0x1b1   :  { %v280_v41 = vadd.f32 %v278_v36, %v167_v38 }
 0x1b3   :  { %v164_v40 = vpop.xlane.xlu0 %163  ;;  %v393_v46 = vmax.f32 %v169_v42, %v280_v41 }
 0x1b4   :  { %v276_v39 = vpop.xlane.xlu1 %275  ;;  %v168_v44 = vadd.f32 %v167_v38, %v164_v40 }
 0x1b5   :  { %v279_v43 = vadd.f32 %v276_v39, %v167_v38 }
 0x1b7   :  { %v392_v49 = vmax.f32 %v168_v44, %v279_v43 }
 0x1cf   :  { %v389_v45 = vpop.xlane.xlu1 %388 }
 0x1d0   :  { %v391_v47 = vadd.f32 %v389_v45, %v167_v38  ;;  %v387_v48 = vpop.xlane.xlu0 %386 }
 0x1d1   :  { %v390_v50 = vadd.f32 %v387_v48, %v167_v38 }
 0x1d2   :  { %v395_v51 = vmax.f32 %v393_v46, %v391_v47 }
 0x1d3   :  { %v394_v52 = vmax.f32 %v392_v49, %v390_v50 }
 0x1d4   :  { %v397_v53 = vsub.f32 %v169_v42, %v395_v51  ;;  %v403_v54 = vsub.f32 %v280_v41, %v395_v51  ;;  %v409_v55 = vsub.f32 %v391_v47, %v395_v51 }
 0x1d5   :  { %v396_v56 = vsub.f32 %v168_v44, %v394_v52  ;;  %v402_v57 = vsub.f32 %v279_v43, %v394_v52  ;;  %v408_v61 = vsub.f32 %v390_v50, %v394_v52 }
 0x1d6   :  { %v400_v58 = vmul.f32 1.442695, %v397_v53  ;;  %v406_v59 = vmul.f32 1.442695, %v403_v54  ;;  %v412_v60 = vmul.f32 1.442695, %v409_v55 }
 0x1d7   :  { %v398_v62 = vmul.f32 1.442695, %v396_v56  ;;  %v404_v63 = vmul.f32 1.442695, %v402_v57  ;;  %v410_v0 = vmul.f32 1.442695, %v408_v61 }
 0x1d8   :  { %752 = vpow2.f32 %v400_v58 }
 0x1d9   :  { %754 = vpow2.f32 %v406_v59 }
 0x1da   :  { %756 = vpow2.f32 %v412_v60 }
 0x1db   :  { %758 = vpow2.f32 %v398_v62 }
 0x1dc   :  { %760 = vpow2.f32 %v404_v63 }
 0x1dd   :  { %762 = vpow2.f32 %v410_v0 }
 0x1e2   :  { %v753_v1 = vpop.eup %752 }
 0x1e3   :  { %v755_v2 = vpop.eup %754 }
 0x1e4   :  { %v757_v3 = vpop.eup %756  ;;  %v415_v4 = vadd.f32 %v755_v2, %v753_v1 }
 0x1e5   :  { %v759_v5 = vpop.eup %758 }
 0x1e6   :  { %v761_v6 = vpop.eup %760  ;;  %v417_v7 = vadd.f32 %v757_v3, %v415_v4 }
 0x1e7   :  { %v414_v8 = vadd.f32 %v761_v6, %v759_v5  ;;  %v763_v9 = vpop.eup %762 }
 0x1e8   :  { %764 = vrcp.f32 %v417_v7 }
 0x1e9   :  { %v416_v10 = vadd.f32 %v763_v9, %v414_v8 }
 0x1eb   :  { %766 = vrcp.f32 %v416_v10 }
 0x1f2   :  { %v765_v11 = vpop.eup %764 }
 0x1f3   :  { %v423_v12 = vmul.f32 %v765_v11, %v753_v1  ;;  %v425_v13 = vmul.f32 %v765_v11, %v755_v2  ;;  %v427_v14 = vmul.f32 %v765_v11, %v757_v3 }
 0x1f5   :  { %v767_v15 = vpop.eup %766  ;;  %v429_v16 = vmul.f32 %v423_v12, %v944_v18  ;;  %v431_v17 = vmul.f32 %v425_v13, %v946_v21  ;;  %v442_v19 = vsel %vm440_vm0, %v423_v12, %v425_v13  ;;  %v435_v28 = vmul.f32 %v427_v14, %v959_v31 }
 0x1f6   :  { %v422_v20 = vmul.f32 %v767_v15, %v759_v5  ;;  %v424_v22 = vmul.f32 %v767_v15, %v761_v6  ;;  %v426_v25 = vmul.f32 %v767_v15, %v763_v9  ;;  %v445_v26 = vsel %vm443_vm1, %v442_v19, %v427_v14 }
 0x1f7   :  { %v433_v27 = vadd.f32 %v431_v17, %v429_v16  ;;  %v448_v29 = vsel %vm446_vm2, %v445_v26, 0.0 }
 0x1f8   :  { %v428_v30 = vmul.f32 %v422_v20, %v948_v23  ;;  %v430_v18 = vmul.f32 %v424_v22, %v950_v24  ;;  %v441_v21 = vsel %vm440_vm0, %v422_v20, %v424_v22  ;;  %450 = vst [vmem:[#allocation9 + $0x8] sm:$0xff] %v448_v29  ;;  %v434_v36 = vmul.f32 %v426_v25, %v961_v33 }
 0x1f9   :  { %v437_v32 = vadd.f32 %v435_v28, %v433_v27  ;;  %v444_v34 = vsel %vm443_vm1, %v441_v21, %v426_v25 }
 0x1fa   :  { %v432_v35 = vadd.f32 %v430_v18, %v428_v30  ;;  %v447_v31 = vsel %vm446_vm2, %v444_v34, 0.0 }
 0x1fb   :  { %439 = vst [vmem:[#allocation8 + $0x8] sm:$0xff] %v437_v32  ;;  %449 = vst [vmem:[#allocation9] sm:$0xff] %v447_v31 }
 0x1fc   :  { %v436_v23 = vadd.f32 %v434_v36, %v432_v35 }
 0x1fd   :  { %823 = shalt.err (!%p820_p6)
}
 0x1fe   :  { %s824_s13 = scalar_lea.hbm %s1023_s6, 256 }
 0x1ff   :  { %p825_p7 = scmp.ne.s32.totalorder %s1023_s6, %s824_s13  ;;  %p828_p8 = scmp.lt.u32.totalorder %s824_s13, %s1023_s6 }
 0x201   :  { %p830_p9 = pnand %p828_p8, %p825_p7 }
 0x203   :  { %833 = shalt.err (!%p830_p9)
}
 0x204   :  { %474 = dma.vmem_to_hbm [thread:$0]  %s469_s4, 256, %s1023_s6, [#allocation10], %s865_s7, %s865_s7, %s866_s8   ;;  %438 = vst [vmem:[#allocation8] sm:$0xff] %v436_v23 }
 0x205   :  { %s834_s20 = scalar_lea.vmem %s980_s9, 256  ;;  %p839_p11 = scmp.lt.s32.totalorder %s980_s9, %s980_s9 }
 0x206   :  { %p835_p10 = scmp.ne.s32.totalorder %s980_s9, %s834_s20  ;;  %p840_p12 = scmp.lt.s32.totalorder %s834_s20, %s834_s20 }
 0x208   :  { %p841_p13 = por %p840_p12, %p839_p11 }
 0x20a   :  { %p842_p0 = pnand %p841_p13, %p835_p10 }
 0x20c   :  { %845 = shalt.err (!%p842_p0)
}
 0x20d   :  { %s846_s1 = scalar_lea.hbm %s1022_s5, 256 }
 0x20e   :  { %p847_p1 = scmp.ne.s32.totalorder %s1022_s5, %s846_s1  ;;  %p850_p2 = scmp.lt.u32.totalorder %s846_s1, %s1022_s5 }
 0x210   :  { %p852_p3 = pnand %p850_p2, %p847_p1 }
 0x212   :  { %855 = shalt.err (!%p852_p3)
}
 0x213   :  { %462 = dma.vmem_to_hbm [thread:$0]  %s980_s9, 256, %s1022_s5, [#allocation5], %s865_s7, %s865_s7, %s866_s8  }
 0x214   :  { %860 = dma.done.wait [#allocation5], 256  }
 0x215   :  { %861 = vsyncadd [#allocation5], 4294967040 }
 0x216   :  { %862 = dma.done.wait [#allocation10], 256  }
 0x217   :  { %863 = vsyncadd [#allocation10], 4294967040 }
 0x218   :  { %481 = vsyncpa [#allocation4], 1 }
 0x219   :  { %482 = vsyncpa [#allocation7], 1 }
 0x21a   :  { %483 = vsyncpa [#allocation5], 1 }
 0x21b   :  { %484 = vsyncpa [#allocation10], 1 }

</bundles_post_ra>
